<compile_context>
chip_gen: v5e
topology: v5e:2x2
jax: 0.10.0
libtpu: 0.0.40
codegen_flags: <defaults>
</compile_context>

<pallas_src>
import functools

import jax
import jax.numpy as jnp
from jax.experimental import pallas as pl
from jax.experimental.pallas import tpu as pltpu

GENE_DIM = 39
NUM_CLASSES = 5
HIDDEN_DIMS = (64, 32, 16, 8)
NUM_CONV = len(HIDDEN_DIMS)
NUM_LAYERS = NUM_CONV + 1          # 4 conv layers + classifier
LANE = 128                         # TPU lane width; all feature dims padded to this
SUBLANE = 8                        # node-row padding granularity
H_WIDTH = HIDDEN_DIMS[-1]          # packed output lanes 0..7  = last hidden h
LOGIT_OFF = H_WIDTH                # packed output lanes 8..12 = classifier logits


# ----------------------------- fused Pallas kernel ---------------------------

def gcn_fused_kernel(a_ref, x_ref, w_ref, b_ref, out_ref):
    """4 x tanh(A_hat @ (h @ W_l) + b_l) then classifier, all VMEM/vreg resident.

    a_ref : (Np, Np)        normalized adjacency (rows/cols >= N are zero)
    x_ref : (Np, 128)       node features, lanes >= GENE_DIM are zero
    w_ref : (5, 128, 128)   zero-padded layer weights; layer 4 (classifier) has its
                            5 columns shifted to lanes 8..12
    b_ref : (5, 1, 128)     zero-padded biases (classifier bias at lanes 8..12)
    out_ref: (Np, 128)      lanes 0..7 = h, lanes 8..12 = logits, rest zero
    """
    a = a_ref[...]
    h = x_ref[...]
    # Static 4-iteration Python loop -> fully unrolled at trace time.
    for l in range(NUM_CONV):
        xw = jnp.dot(h, w_ref[l], preferred_element_type=jnp.float32)
        h = jnp.tanh(jnp.dot(a, xw, preferred_element_type=jnp.float32) + b_ref[l])
    # Classifier columns live at lanes 8..12; lanes 0..7 of `logits` are zero and
    # lanes 8..127 of `h` are zero, so a single add packs both into one slab.
    logits = jnp.dot(h, w_ref[NUM_CONV],
                     preferred_element_type=jnp.float32) + b_ref[NUM_CONV]
    out_ref[...] = h + logits


# ------------------------------ wrapper ---------------------------------------

@jax.jit
def gcn_forward_fused(a_hat, x, w_slab, b_slab):
    n = x.shape[0]
    n_pad = ((n + SUBLANE - 1) // SUBLANE) * SUBLANE

    # Lane-pad features to 128 and sublane-pad node rows; padded A_hat rows/cols
    # are zero so real rows are unaffected (padded output rows are sliced off).
    x_p = jnp.zeros((n_pad, LANE), jnp.float32).at[:n, :GENE_DIM].set(x)
    a_p = jnp.zeros((n_pad, n_pad), jnp.float32).at[:n, :n].set(a_hat)

    resident_bytes = 4 * (n_pad * n_pad                      # a_hat
                          + 3 * n_pad * LANE                 # x, h-live, out
                          + NUM_LAYERS * LANE * LANE         # weight slab
                          + NUM_LAYERS * LANE)               # bias slab
    vmem_limit = min(max(2 * resident_bytes + (8 << 20), 16 << 20), 64 << 20)

    cost = pl.CostEstimate(
        flops=2 * n_pad * LANE * (NUM_LAYERS * LANE + NUM_CONV * n_pad),
        transcendentals=NUM_CONV * n_pad * LANE,
        bytes_accessed=resident_bytes,
    )

    vmem = pl.BlockSpec(memory_space=pltpu.MemorySpace.VMEM)
    out_p = pl.pallas_call(
        gcn_fused_kernel,
        out_shape=jax.ShapeDtypeStruct((n_pad, LANE), jnp.float32),
        in_specs=[vmem] * 4,
        out_specs=vmem,
        compiler_params=pltpu.CompilerParams(vmem_limit_bytes=vmem_limit),
        cost_estimate=cost,
    )(a_p, x_p, w_slab, b_slab)

    out = out_p[:n, LOGIT_OFF:LOGIT_OFF + NUM_CLASSES]   # (N, 5) logits
    h = out_p[:n, :H_WIDTH]                               # (N, 8) last hidden
    return out, h


# ----------------------------- model glue (plain JAX) --------------------------

def build_norm_adj(edge_index, n):
    """Dense D^{-1/2}(A + I)D^{-1/2} from edge_index [2, E] (src, dst).

    Hoisted out of the forward: static per-graph, computed once.
    NOTE: duplicate edges are scatter-added; __main__ passes a coalesced edge set.
    """
    src, dst = edge_index[0], edge_index[1]
    a = jnp.zeros((n, n), jnp.float32).at[dst, src].add(1.0)  # message src -> dst
    a = a + jnp.eye(n, dtype=jnp.float32)                     # self loops
    deg = a.sum(axis=1)
    d_inv_sqrt = jnp.where(deg > 0, 1.0 / jnp.sqrt(deg), 0.0)
    return d_inv_sqrt[:, None] * a * d_inv_sqrt[None, :]


def init_params(key):
    """Deterministic glorot-style init matching the module's layer shapes."""
    dims = (GENE_DIM,) + HIDDEN_DIMS
    params = {"conv_w": [], "conv_b": []}
    keys = jax.random.split(key, NUM_CONV + 1)
    for i in range(NUM_CONV):
        f_in, f_out = dims[i], dims[i + 1]
        limit = jnp.sqrt(6.0 / (f_in + f_out))
        w = jax.random.uniform(keys[i], (f_in, f_out), jnp.float32, -limit, limit)
        params["conv_w"].append(w)
        params["conv_b"].append(jnp.zeros((1, f_out), jnp.float32))
    limit = jnp.sqrt(6.0 / (HIDDEN_DIMS[-1] + NUM_CLASSES))
    params["cls_w"] = jax.random.uniform(
        keys[-1], (HIDDEN_DIMS[-1], NUM_CLASSES), jnp.float32, -limit, limit)
    params["cls_b"] = jnp.zeros((1, NUM_CLASSES), jnp.float32)
    return params


def pack_params_for_kernel(params):
    """Pack all layers into ONE weight slab + ONE bias slab (zero-padded, exact).

    Conv layers l=0..3: W_l -> slab[l, :F_in, :F_out], b_l -> bias[l, 0, :F_out].
    Classifier (l=4): columns shifted to lanes LOGIT_OFF..LOGIT_OFF+4 so the packed
    (N,128) output carries h in lanes 0..7 and logits in lanes 8..12.
    """
    w_slab = jnp.zeros((NUM_LAYERS, LANE, LANE), jnp.float32)
    b_slab = jnp.zeros((NUM_LAYERS, 1, LANE), jnp.float32)
    for l, (w, b) in enumerate(zip(params["conv_w"], params["conv_b"])):
        w_slab = w_slab.at[l, :w.shape[0], :w.shape[1]].set(w)
        b_slab = b_slab.at[l, 0, :b.shape[1]].set(b[0])
    wc, bc = params["cls_w"], params["cls_b"]
    w_slab = w_slab.at[NUM_CONV, :wc.shape[0],
                       LOGIT_OFF:LOGIT_OFF + NUM_CLASSES].set(wc)
    b_slab = b_slab.at[NUM_CONV, 0,
                       LOGIT_OFF:LOGIT_OFF + NUM_CLASSES].set(bc[0])
    return w_slab, b_slab


# ------------------------------- main ------------------------------------------

if __name__ == "__main__":
    key = jax.random.PRNGKey(0)
    k_feat, k_param = jax.random.split(key)

    N = 8  # number of graph nodes (small example)
    x = jax.random.normal(k_feat, (N, GENE_DIM), jnp.float32)

    # deterministic ring graph (undirected): edges i <-> (i+1) % N
    src = jnp.arange(N, dtype=jnp.int32)
    dst = (src + 1) % N
    edge_index = jnp.stack(
        [jnp.concatenate([src, dst]), jnp.concatenate([dst, src])], axis=0
    )  # shape [2, 2N]

    params = init_params(k_param)
    a_hat = build_norm_adj(edge_index, N)            # hoisted: once per graph
    w_slab, b_slab = pack_params_for_kernel(params)  # once per parameter set

    out, h = gcn_forward_fused(a_hat, x, w_slab, b_slab)
    jax.block_until_ready((out, h))

    # plain-JAX reference check (same math, f32, unpadded params)
    ref_h = x
    for w, b in zip(params["conv_w"], params["conv_b"]):
        ref_h = jnp.tanh(a_hat @ (ref_h @ w) + b)
    ref_out = ref_h @ params["cls_w"] + params["cls_b"]

    assert out.shape == (N, NUM_CLASSES)
    assert h.shape == (N, HIDDEN_DIMS[-1])
    assert jnp.allclose(out, ref_out, rtol=1e-4, atol=1e-4)
    assert jnp.allclose(h, ref_h, rtol=1e-4, atol=1e-4)
    print("KERNEL_OK")
</pallas_src>

<mosaic_0001>
module attributes {stable_mosaic.version = 11 : i64} {
  func.func @gcn_fused_kernel(%arg0: memref<8x8xf32, #tpu.memory_space<vmem>>, %arg1: memref<8x128xf32, #tpu.memory_space<vmem>>, %arg2: memref<5x128x128xf32, #tpu.memory_space<vmem>>, %arg3: memref<5x1x128xf32, #tpu.memory_space<vmem>>, %arg4: memref<8x128xf32, #tpu.memory_space<vmem>>) attributes {dimension_semantics = [], scalar_prefetch = 0 : i64, scratch_operands = 0 : i64, tpu.core_type = #tpu.core_type<tc>} {
    %c0 = arith.constant 0 : index
    %c0_0 = arith.constant 0 : index
    %0 = vector.load %arg0[%c0, %c0_0] : memref<8x8xf32, #tpu.memory_space<vmem>>, vector<8x8xf32>
    %c0_1 = arith.constant 0 : index
    %c0_2 = arith.constant 0 : index
    %1 = vector.load %arg1[%c0_1, %c0_2] : memref<8x128xf32, #tpu.memory_space<vmem>>, vector<8x128xf32>
    %c0_3 = arith.constant 0 : index
    %c0_4 = arith.constant 0 : index
    %c0_5 = arith.constant 0 : index
    %2 = vector.load %arg2[%c0_3, %c0_4, %c0_5] : memref<5x128x128xf32, #tpu.memory_space<vmem>>, vector<1x128x128xf32>
    %3 = vector.shape_cast %2 : vector<1x128x128xf32> to vector<128x128xf32>
    %cst = arith.constant dense<0.000000e+00> : vector<8x128xf32>
    %4 = tpu.matmul %1, %3, %cst {dimension_numbers = #tpu.dot_dimension_numbers<[1], [0], [0], [1], [0, 0, 1, 1], [], []>} : vector<8x128xf32>, vector<128x128xf32>, vector<8x128xf32> -> vector<8x128xf32>
    %cst_6 = arith.constant dense<0.000000e+00> : vector<8x128xf32>
    %5 = tpu.matmul %0, %4, %cst_6 {dimension_numbers = #tpu.dot_dimension_numbers<[1], [0], [0], [1], [0, 0, 1, 1], [], []>} : vector<8x8xf32>, vector<8x128xf32>, vector<8x128xf32> -> vector<8x128xf32>
    %c0_7 = arith.constant 0 : index
    %c0_8 = arith.constant 0 : index
    %c0_9 = arith.constant 0 : index
    %6 = vector.load %arg3[%c0_7, %c0_8, %c0_9] : memref<5x1x128xf32, #tpu.memory_space<vmem>>, vector<1x1x128xf32>
    %7 = vector.shape_cast %6 : vector<1x1x128xf32> to vector<1x128xf32>
    %8 = vector.broadcast %7 : vector<1x128xf32> to vector<8x128xf32>
    %9 = arith.addf %5, %8 : vector<8x128xf32>
    %10 = math.tanh %9 : vector<8x128xf32>
    %c1 = arith.constant 1 : index
    %c0_10 = arith.constant 0 : index
    %c0_11 = arith.constant 0 : index
    %11 = vector.load %arg2[%c1, %c0_10, %c0_11] : memref<5x128x128xf32, #tpu.memory_space<vmem>>, vector<1x128x128xf32>
    %12 = vector.shape_cast %11 : vector<1x128x128xf32> to vector<128x128xf32>
    %cst_12 = arith.constant dense<0.000000e+00> : vector<8x128xf32>
    %13 = tpu.matmul %10, %12, %cst_12 {dimension_numbers = #tpu.dot_dimension_numbers<[1], [0], [0], [1], [0, 0, 1, 1], [], []>} : vector<8x128xf32>, vector<128x128xf32>, vector<8x128xf32> -> vector<8x128xf32>
    %cst_13 = arith.constant dense<0.000000e+00> : vector<8x128xf32>
    %14 = tpu.matmul %0, %13, %cst_13 {dimension_numbers = #tpu.dot_dimension_numbers<[1], [0], [0], [1], [0, 0, 1, 1], [], []>} : vector<8x8xf32>, vector<8x128xf32>, vector<8x128xf32> -> vector<8x128xf32>
    %c1_14 = arith.constant 1 : index
    %c0_15 = arith.constant 0 : index
    %c0_16 = arith.constant 0 : index
    %15 = vector.load %arg3[%c1_14, %c0_15, %c0_16] : memref<5x1x128xf32, #tpu.memory_space<vmem>>, vector<1x1x128xf32>
    %16 = vector.shape_cast %15 : vector<1x1x128xf32> to vector<1x128xf32>
    %17 = vector.broadcast %16 : vector<1x128xf32> to vector<8x128xf32>
    %18 = arith.addf %14, %17 : vector<8x128xf32>
    %19 = math.tanh %18 : vector<8x128xf32>
    %c2 = arith.constant 2 : index
    %c0_17 = arith.constant 0 : index
    %c0_18 = arith.constant 0 : index
    %20 = vector.load %arg2[%c2, %c0_17, %c0_18] : memref<5x128x128xf32, #tpu.memory_space<vmem>>, vector<1x128x128xf32>
    %21 = vector.shape_cast %20 : vector<1x128x128xf32> to vector<128x128xf32>
    %cst_19 = arith.constant dense<0.000000e+00> : vector<8x128xf32>
    %22 = tpu.matmul %19, %21, %cst_19 {dimension_numbers = #tpu.dot_dimension_numbers<[1], [0], [0], [1], [0, 0, 1, 1], [], []>} : vector<8x128xf32>, vector<128x128xf32>, vector<8x128xf32> -> vector<8x128xf32>
    %cst_20 = arith.constant dense<0.000000e+00> : vector<8x128xf32>
    %23 = tpu.matmul %0, %22, %cst_20 {dimension_numbers = #tpu.dot_dimension_numbers<[1], [0], [0], [1], [0, 0, 1, 1], [], []>} : vector<8x8xf32>, vector<8x128xf32>, vector<8x128xf32> -> vector<8x128xf32>
    %c2_21 = arith.constant 2 : index
    %c0_22 = arith.constant 0 : index
    %c0_23 = arith.constant 0 : index
    %24 = vector.load %arg3[%c2_21, %c0_22, %c0_23] : memref<5x1x128xf32, #tpu.memory_space<vmem>>, vector<1x1x128xf32>
    %25 = vector.shape_cast %24 : vector<1x1x128xf32> to vector<1x128xf32>
    %26 = vector.broadcast %25 : vector<1x128xf32> to vector<8x128xf32>
    %27 = arith.addf %23, %26 : vector<8x128xf32>
    %28 = math.tanh %27 : vector<8x128xf32>
    %c3 = arith.constant 3 : index
    %c0_24 = arith.constant 0 : index
    %c0_25 = arith.constant 0 : index
    %29 = vector.load %arg2[%c3, %c0_24, %c0_25] : memref<5x128x128xf32, #tpu.memory_space<vmem>>, vector<1x128x128xf32>
    %30 = vector.shape_cast %29 : vector<1x128x128xf32> to vector<128x128xf32>
    %cst_26 = arith.constant dense<0.000000e+00> : vector<8x128xf32>
    %31 = tpu.matmul %28, %30, %cst_26 {dimension_numbers = #tpu.dot_dimension_numbers<[1], [0], [0], [1], [0, 0, 1, 1], [], []>} : vector<8x128xf32>, vector<128x128xf32>, vector<8x128xf32> -> vector<8x128xf32>
    %cst_27 = arith.constant dense<0.000000e+00> : vector<8x128xf32>
    %32 = tpu.matmul %0, %31, %cst_27 {dimension_numbers = #tpu.dot_dimension_numbers<[1], [0], [0], [1], [0, 0, 1, 1], [], []>} : vector<8x8xf32>, vector<8x128xf32>, vector<8x128xf32> -> vector<8x128xf32>
    %c3_28 = arith.constant 3 : index
    %c0_29 = arith.constant 0 : index
    %c0_30 = arith.constant 0 : index
    %33 = vector.load %arg3[%c3_28, %c0_29, %c0_30] : memref<5x1x128xf32, #tpu.memory_space<vmem>>, vector<1x1x128xf32>
    %34 = vector.shape_cast %33 : vector<1x1x128xf32> to vector<1x128xf32>
    %35 = vector.broadcast %34 : vector<1x128xf32> to vector<8x128xf32>
    %36 = arith.addf %32, %35 : vector<8x128xf32>
    %37 = math.tanh %36 : vector<8x128xf32>
    %c4 = arith.constant 4 : index
    %c0_31 = arith.constant 0 : index
    %c0_32 = arith.constant 0 : index
    %38 = vector.load %arg2[%c4, %c0_31, %c0_32] : memref<5x128x128xf32, #tpu.memory_space<vmem>>, vector<1x128x128xf32>
    %39 = vector.shape_cast %38 : vector<1x128x128xf32> to vector<128x128xf32>
    %cst_33 = arith.constant dense<0.000000e+00> : vector<8x128xf32>
    %40 = tpu.matmul %37, %39, %cst_33 {dimension_numbers = #tpu.dot_dimension_numbers<[1], [0], [0], [1], [0, 0, 1, 1], [], []>} : vector<8x128xf32>, vector<128x128xf32>, vector<8x128xf32> -> vector<8x128xf32>
    %c4_34 = arith.constant 4 : index
    %c0_35 = arith.constant 0 : index
    %c0_36 = arith.constant 0 : index
    %41 = vector.load %arg3[%c4_34, %c0_35, %c0_36] : memref<5x1x128xf32, #tpu.memory_space<vmem>>, vector<1x1x128xf32>
    %42 = vector.shape_cast %41 : vector<1x1x128xf32> to vector<1x128xf32>
    %43 = vector.broadcast %42 : vector<1x128xf32> to vector<8x128xf32>
    %44 = arith.addf %40, %43 : vector<8x128xf32>
    %45 = arith.addf %37, %44 : vector<8x128xf32>
    %c0_37 = arith.constant 0 : index
    %c0_38 = arith.constant 0 : index
    %46 = vector.load %arg4[%c0_37, %c0_38] : memref<8x128xf32, #tpu.memory_space<vmem>>, vector<8x128xf32>
    tpu.vector_store %arg4[%c0_37, %c0_38], %45 {strides = array<i32>} : memref<8x128xf32, #tpu.memory_space<vmem>>, vector<8x128xf32>,
    return
  }
}

</mosaic_0001>

<bundles_post_ra>
// kernel: gcn_forward_fused.1
= control target key start
LH: loop header
LB: loop body
LE: loop exit
PB: predicated region body
PF: predicated region fallthrough
CT: control target
= control target key end

     0   :  { %9 = vsyncpa [#allocation3], 0  ;;  %s388_s18 = smov [#allocation2]   ;;  %s389_s20 = smov 128   ;;  %s453_s0 = inlined_call_operand.vmem [shape: f32[8,8], index: 0, kind: input, shape index: {}]   ;;  %s454_s1 = inlined_call_operand.vmem [shape: f32[8,128], index: 1, kind: input, shape index: {}]   ;;  %s455_s2 = inlined_call_operand.hbm [shape: f32[5,128,128], index: 2, kind: input, shape index: {}]   ;;  %s456_s3 = inlined_call_operand.vmem [shape: f32[5,1,128], index: 3, kind: input, shape index: {}]   ;;  %s457_s4 = inlined_call_operand.vmem [shape: f32[8,128], index: 4, kind: output, shape index: {}]  }
   0x1   :  { %s18_s17 = sshll.u32 %s455_s2, 4  ;;  %s20_s19 = sshll.u32 %s388_s18, 4  ;;  %s19_s17 = int_to_ptr.hbm [resolvable:$true] %s18_s17  ;;  %s21_s19 = int_to_ptr.vmem [resolvable:$true] %s20_s19 }
   0x2   :  { %s390_s21 = smov 8  }
   0x3   :  { %26 = dma.hbm_to_vmem [thread:$0]  %s19_s17, 10240, %s21_s19, [#allocation3], %s389_s20, %s389_s20, %s390_s21  }
   0x4   :  { %386 = dma.done.wait [#allocation3], 10240  }
   0x5   :  { %387 = vsyncadd [#allocation3], 4294957056  ;;  %v50_v0 = vld [vmem:[#allocation2 + $0x78] sm:$0xff]  ;;  %v49_v1 = vld [vmem:[#allocation2 + $0x70] sm:$0xff]  ;;  %vm75_vm0 = vcmask 64512  }
   0x6   :  { %51 = vmatpush.msra.mxu0 %v50_v0  ;;  %v48_v2 = vld [vmem:[#allocation2 + $0x68] sm:$0xff]  ;;  %v47_v3 = vld [vmem:[#allocation2 + $0x60] sm:$0xff]  ;;  %v46_v4 = vld [vmem:[#allocation2 + $0x58] sm:$0xff] }
   0x7   :  { %v45_v5 = vld [vmem:[#allocation2 + $0x50] sm:$0xff]  ;;  %v44_v6 = vld [vmem:[#allocation2 + $0x48] sm:$0xff]  ;;  %v43_v7 = vld [vmem:[#allocation2 + $0x40] sm:$0xff] }
   0x8   :  { %52 = vmatpush.msra.mxu0 %v49_v1  ;;  %v42_v8 = vld [vmem:[#allocation2 + $0x38] sm:$0xff]  ;;  %v41_v9 = vld [vmem:[#allocation2 + $0x30] sm:$0xff]  ;;  %v40_v10 = vld [vmem:[#allocation2 + $0x28] sm:$0xff] }
   0x9   :  { %v39_v11 = vld [vmem:[#allocation2 + $0x20] sm:$0xff]  ;;  %v38_v12 = vld [vmem:[#allocation2 + $0x18] sm:$0xff]  ;;  %v37_v13 = vld [vmem:[#allocation2 + $0x10] sm:$0xff] }
   0xa   :  { %53 = vmatpush.msra.mxu0 %v48_v2  ;;  %v36_v14 = vld [vmem:[#allocation2 + $0x8] sm:$0xff]  ;;  %v35_v15 = vld [vmem:[#allocation2] sm:$0xff]  ;;  %v116_v17 = vld [vmem:[#allocation2 + $0xf8] sm:$0xff] }
   0xb   :  { %v34_v16 = vld [vmem:[%s454_s1] sm:$0xff]  ;;  %v115_v18 = vld [vmem:[#allocation2 + $0xf0] sm:$0xff]  ;;  %117 = vmatpush.msra.mxu2 %v116_v17  ;;  %v114_v19 = vld [vmem:[#allocation2 + $0xe8] sm:$0xff] }
   0xc   :  { %54 = vmatpush.msra.mxu0 %v47_v3  ;;  %v113_v20 = vld [vmem:[#allocation2 + $0xe0] sm:$0xff]  ;;  %v112_v21 = vld [vmem:[#allocation2 + $0xd8] sm:$0xff]  ;;  %v111_v22 = vld [vmem:[#allocation2 + $0xd0] sm:$0xff] }
   0xd   :  { %118 = vmatpush.msra.mxu2 %v115_v18  ;;  %v110_v23 = vld [vmem:[#allocation2 + $0xc8] sm:$0xff]  ;;  %v109_v24 = vld [vmem:[#allocation2 + $0xc0] sm:$0xff]  ;;  %v108_v25 = vld [vmem:[#allocation2 + $0xb8] sm:$0xff] }
   0xe   :  { %55 = vmatpush.msra.mxu0 %v46_v4  ;;  %v107_v26 = vld [vmem:[#allocation2 + $0xb0] sm:$0xff]  ;;  %v106_v27 = vld [vmem:[#allocation2 + $0xa8] sm:$0xff]  ;;  %v425_v28 = vld [vmem:[%s453_s0] sm:$0xff] }
   0xf   :  { %119 = vmatpush.msra.mxu2 %v114_v19  ;;  %v105_v30 = vld [vmem:[#allocation2 + $0xa0] sm:$0xff]  ;;  %v104_v31 = vld [vmem:[#allocation2 + $0x98] sm:$0xff]  ;;  %v103_v32 = vld [vmem:[#allocation2 + $0x90] sm:$0xff] }
  0x10   :  { %56 = vmatpush.msra.mxu0 %v45_v5  ;;  %v102_v33 = vld [vmem:[#allocation2 + $0x88] sm:$0xff]  ;;  %v101_v34 = vld [vmem:[#allocation2 + $0x80] sm:$0xff]  ;;  %v179_v39 = vld [vmem:[#allocation2 + $0x178] sm:$0xff] }
  0x11   :  { %120 = vmatpush.msra.mxu2 %v113_v20  ;;  %v349_v35 = vld [vmem:[%s456_s3] ss:$0 sm:$0xff]  ;;  %v178_v40 = vld [vmem:[#allocation2 + $0x170] sm:$0xff]  ;;  %v177_v41 = vld [vmem:[#allocation2 + $0x168] sm:$0xff] }
  0x12   :  { %57 = vmatpush.msra.mxu0 %v44_v6  ;;  %v176_v42 = vld [vmem:[#allocation2 + $0x160] sm:$0xff]  ;;  %v175_v43 = vld [vmem:[#allocation2 + $0x158] sm:$0xff]  ;;  %v174_v44 = vld [vmem:[#allocation2 + $0x150] sm:$0xff] }
  0x13   :  { %121 = vmatpush.msra.mxu2 %v112_v21  ;;  %v173_v45 = vld [vmem:[#allocation2 + $0x148] sm:$0xff]  ;;  %v172_v46 = vld [vmem:[#allocation2 + $0x140] sm:$0xff]  ;;  %v171_v47 = vld [vmem:[#allocation2 + $0x138] sm:$0xff] }
  0x14   :  { %58 = vmatpush.msra.mxu0 %v43_v7  ;;  %v170_v48 = vld [vmem:[#allocation2 + $0x130] sm:$0xff]  ;;  %v169_v49 = vld [vmem:[#allocation2 + $0x128] sm:$0xff]  ;;  %v168_v51 = vld [vmem:[#allocation2 + $0x120] sm:$0xff] }
  0x15   :  { %122 = vmatpush.msra.mxu2 %v111_v22  ;;  %v167_v52 = vld [vmem:[#allocation2 + $0x118] sm:$0xff]  ;;  %v166_v53 = vld [vmem:[#allocation2 + $0x110] sm:$0xff]  ;;  %v165_v54 = vld [vmem:[#allocation2 + $0x108] sm:$0xff] }
  0x16   :  { %59 = vmatpush.msra.mxu0 %v42_v8  ;;  %v164_v55 = vld [vmem:[#allocation2 + $0x100] sm:$0xff]  ;;  %v242_v61 = vld [vmem:[#allocation2 + $0x1f8] sm:$0xff]  ;;  %v241_v62 = vld [vmem:[#allocation2 + $0x1f0] sm:$0xff] }
  0x17   :  { %123 = vmatpush.msra.mxu2 %v110_v23  ;;  %v350_v56 = vld [vmem:[%s456_s3 + $0x1] ss:$0 sm:$0xff]  ;;  %v240_v63 = vld [vmem:[#allocation2 + $0x1e8] sm:$0xff]  ;;  %v238_v1 = vld [vmem:[#allocation2 + $0x1d8] sm:$0xff] }
  0x18   :  { %60 = vmatpush.msra.mxu0 %v41_v9  ;;  %v239_v0 = vld [vmem:[#allocation2 + $0x1e0] sm:$0xff]  ;;  %v237_v2 = vld [vmem:[#allocation2 + $0x1d0] sm:$0xff]  ;;  %v236_v3 = vld [vmem:[#allocation2 + $0x1c8] sm:$0xff] }
  0x19   :  { %124 = vmatpush.msra.mxu2 %v109_v24  ;;  %v235_v4 = vld [vmem:[#allocation2 + $0x1c0] sm:$0xff]  ;;  %v234_v5 = vld [vmem:[#allocation2 + $0x1b8] sm:$0xff]  ;;  %v233_v6 = vld [vmem:[#allocation2 + $0x1b0] sm:$0xff] }
  0x1a   :  { %61 = vmatpush.msra.mxu0 %v40_v10  ;;  %v232_v7 = vld [vmem:[#allocation2 + $0x1a8] sm:$0xff]  ;;  %v231_v8 = vld [vmem:[#allocation2 + $0x1a0] sm:$0xff]  ;;  %v230_v9 = vld [vmem:[#allocation2 + $0x198] sm:$0xff] }
  0x1b   :  { %125 = vmatpush.msra.mxu2 %v108_v25  ;;  %v229_v10 = vld [vmem:[#allocation2 + $0x190] sm:$0xff]  ;;  %v305_v17 = vld [vmem:[#allocation2 + $0x278] sm:$0xff]  ;;  %v303_v19 = vld [vmem:[#allocation2 + $0x268] sm:$0xff] }
  0x1c   :  { %62 = vmatpush.msra.mxu0 %v39_v11  ;;  %v228_v11 = vld [vmem:[#allocation2 + $0x188] sm:$0xff]  ;;  %v304_v18 = vld [vmem:[#allocation2 + $0x270] sm:$0xff]  ;;  %v302_v20 = vld [vmem:[#allocation2 + $0x260] sm:$0xff] }
  0x1d   :  { %126 = vmatpush.msra.mxu2 %v107_v26  ;;  %v301_v21 = vld [vmem:[#allocation2 + $0x258] sm:$0xff]  ;;  %v300_v22 = vld [vmem:[#allocation2 + $0x250] sm:$0xff]  ;;  %v299_v23 = vld [vmem:[#allocation2 + $0x248] sm:$0xff] }
  0x1e   :  { %63 = vmatpush.msra.mxu0 %v38_v12  ;;  %v227_v12 = vld [vmem:[#allocation2 + $0x180] sm:$0xff]  ;;  %v297_v25 = vld [vmem:[#allocation2 + $0x238] sm:$0xff]  ;;  %v296_v26 = vld [vmem:[#allocation2 + $0x230] sm:$0xff] }
  0x1f   :  { %127 = vmatpush.msra.mxu2 %v106_v27  ;;  %v298_v24 = vld [vmem:[#allocation2 + $0x240] sm:$0xff]  ;;  %v295_v27 = vld [vmem:[#allocation2 + $0x228] sm:$0xff] }
  0x20   :  { %64 = vmatpush.msra.mxu0 %v37_v13  ;;  %v351_v13 = vld [vmem:[%s456_s3 + $0x2] ss:$0 sm:$0xff] }
  0x21   :  { %128 = vmatpush.msra.mxu2 %v105_v30  ;;  %v294_v30 = vld [vmem:[#allocation2 + $0x220] sm:$0xff] }
  0x22   :  { %65 = vmatpush.msra.mxu0 %v36_v14 }
  0x23   :  { %129 = vmatpush.msra.mxu2 %v104_v31  ;;  %v293_v31 = vld [vmem:[#allocation2 + $0x218] sm:$0xff] }
  0x24   :  { %66 = vmatpush.msra.mxu0 %v35_v15 }
  0x25   :  { %67 = vmatmul.f32.vlgmr.msra.gmra.mxu0 %v34_v16  ;;  %130 = vmatpush.msra.mxu2 %v103_v32  ;;  %v292_v32 = vld [vmem:[#allocation2 + $0x210] sm:$0xff] }
  0x27   :  { %131 = vmatpush.msra.mxu2 %v102_v33  ;;  %v291_v33 = vld [vmem:[#allocation2 + $0x208] sm:$0xff] }
  0x29   :  { %132 = vmatpush.msra.mxu2 %v101_v34  ;;  %v290_v34 = vld [vmem:[#allocation2 + $0x200] sm:$0xff] }
  0x2b   :  { %311 = vmatpush.msrb.mxu2 %v305_v17 }
  0x2d   :  { %312 = vmatpush.msrb.mxu2 %v304_v18 }
  0x2f   :  { %313 = vmatpush.msrb.mxu2 %v303_v19 }
  0x31   :  { %314 = vmatpush.msrb.mxu2 %v302_v20 }
  0x33   :  { %315 = vmatpush.msrb.mxu2 %v301_v21 }
  0x35   :  { %316 = vmatpush.msrb.mxu2 %v300_v22 }
  0x37   :  { %317 = vmatpush.msrb.mxu2 %v299_v23 }
  0x39   :  { %318 = vmatpush.msrb.mxu2 %v298_v24 }
  0x3b   :  { %319 = vmatpush.msrb.mxu2 %v297_v25 }
  0x3d   :  { %320 = vmatpush.msrb.mxu2 %v296_v26 }
  0x3f   :  { %321 = vmatpush.msrb.mxu2 %v295_v27 }
  0x41   :  { %322 = vmatpush.msrb.mxu2 %v294_v30 }
  0x43   :  { %323 = vmatpush.msrb.mxu2 %v293_v31 }
  0x45   :  { %324 = vmatpush.msrb.mxu2 %v292_v32 }
  0x47   :  { %325 = vmatpush.msrb.mxu2 %v291_v33 }
  0x49   :  { %326 = vmatpush.msrb.mxu2 %v290_v34 }
  0xa2   :  { %v68_v29 = vpop.f32.mrf.mxu0 }
  0xa3   :  { %94 = vmatpush.msra.mxu1 %v68_v29 }
  0xa4   :  { %338 = vmatmul.msk.f32.vlgmr.msra.gmra.mxu1 %vm75_vm0, %v425_v28 }
  0xa5   :  { %180 = vmatpush.msrb.mxu1 %v179_v39 }
  0xa7   :  { %181 = vmatpush.msrb.mxu1 %v178_v40 }
  0xa9   :  { %182 = vmatpush.msrb.mxu1 %v177_v41 }
  0xab   :  { %183 = vmatpush.msrb.mxu1 %v176_v42 }
  0xad   :  { %184 = vmatpush.msrb.mxu1 %v175_v43 }
  0xaf   :  { %185 = vmatpush.msrb.mxu1 %v174_v44 }
  0xb1   :  { %186 = vmatpush.msrb.mxu1 %v173_v45 }
  0xb3   :  { %187 = vmatpush.msrb.mxu1 %v172_v46 }
  0xb5   :  { %188 = vmatpush.msrb.mxu1 %v171_v47 }
  0xb7   :  { %189 = vmatpush.msrb.mxu1 %v170_v48 }
  0xb9   :  { %190 = vmatpush.msrb.mxu1 %v169_v49 }
  0xbb   :  { %191 = vmatpush.msrb.mxu1 %v168_v51 }
  0xbd   :  { %192 = vmatpush.msrb.mxu1 %v167_v52 }
  0xbf   :  { %193 = vmatpush.msrb.mxu1 %v166_v53 }
  0xc1   :  { %194 = vmatpush.msrb.mxu1 %v165_v54 }
  0xc3   :  { %195 = vmatpush.msrb.mxu1 %v164_v55 }
 0x121   :  { %v96_v36 = vpop.f32.mrf.mxu1 }
 0x122   :  { %v97_v37 = vadd.f32 %v349_v35, %v96_v36  ;;  %v352_v35 = vld [vmem:[%s456_s3 + $0x3] ss:$0 sm:$0xff] }
 0x124   :  { %354 = vtanh.f32 %v97_v37 }
 0x12a   :  { %v355_v38 = vpop.eup %354 }
 0x12b   :  { %133 = vmatmul.f32.vlgmr.msra.gmra.mxu2 %v355_v38 }
 0x1ae   :  { %v134_v50 = vpop.f32.mrf.mxu2 }
 0x1af   :  { %157 = vmatpush.msra.mxu3 %v134_v50 }
 0x1b0   :  { %340 = vmatmul.msk.f32.vlgmr.msra.gmra.mxu3 %vm75_vm0, %v425_v28 }
 0x233   :  { %v159_v57 = vpop.f32.mrf.mxu3 }
 0x234   :  { %v160_v58 = vadd.f32 %v350_v56, %v159_v57 }
 0x236   :  { %356 = vtanh.f32 %v160_v58 }
 0x23c   :  { %v357_v59 = vpop.eup %356 }
 0x23d   :  { %196 = vmatmul.f32.vlgmr.msrb.gmra.mxu1 %v357_v59 }
 0x2ba   :  { %v197_v60 = vpop.f32.mrf.mxu1 }
 0x2bb   :  { %220 = vmatpush.msrb.mxu3 %v197_v60 }
 0x2bc   :  { %342 = vmatmul.msk.f32.vlgmr.msrb.gmra.mxu3 %vm75_vm0, %v425_v28 }
 0x2bd   :  { %243 = vmatpush.msra.mxu3 %v242_v61 }
 0x2bf   :  { %244 = vmatpush.msra.mxu3 %v241_v62 }
 0x2c1   :  { %245 = vmatpush.msra.mxu3 %v240_v63 }
 0x2c3   :  { %246 = vmatpush.msra.mxu3 %v239_v0 }
 0x2c5   :  { %247 = vmatpush.msra.mxu3 %v238_v1 }
 0x2c7   :  { %248 = vmatpush.msra.mxu3 %v237_v2 }
 0x2c9   :  { %249 = vmatpush.msra.mxu3 %v236_v3 }
 0x2cb   :  { %250 = vmatpush.msra.mxu3 %v235_v4 }
 0x2cd   :  { %251 = vmatpush.msra.mxu3 %v234_v5 }
 0x2cf   :  { %252 = vmatpush.msra.mxu3 %v233_v6 }
 0x2d1   :  { %253 = vmatpush.msra.mxu3 %v232_v7 }
 0x2d3   :  { %254 = vmatpush.msra.mxu3 %v231_v8 }
 0x2d5   :  { %255 = vmatpush.msra.mxu3 %v230_v9 }
 0x2d7   :  { %256 = vmatpush.msra.mxu3 %v229_v10 }
 0x2d9   :  { %257 = vmatpush.msra.mxu3 %v228_v11 }
 0x2db   :  { %258 = vmatpush.msra.mxu3 %v227_v12 }
 0x33f   :  { %v222_v14 = vpop.f32.mrf.mxu3 }
 0x340   :  { %v223_v15 = vadd.f32 %v351_v13, %v222_v14 }
 0x342   :  { %358 = vtanh.f32 %v223_v15 }
 0x348   :  { %v359_v16 = vpop.eup %358 }
 0x349   :  { %259 = vmatmul.f32.vlgmr.msra.gmra.mxu3 %v359_v16 }
 0x3cc   :  { %v260_v29 = vpop.f32.mrf.mxu3 }
 0x3cd   :  { %283 = vmatpush.msrb.mxu0 %v260_v29 }
 0x3ce   :  { %344 = vmatmul.msk.f32.vlgmr.msrb.gmra.mxu0 %vm75_vm0, %v425_v28  ;;  %v353_v28 = vld [vmem:[%s456_s3 + $0x4] ss:$0 sm:$0xff] }
 0x44b   :  { %v285_v36 = vpop.f32.mrf.mxu0 }
 0x44c   :  { %v286_v37 = vadd.f32 %v352_v35, %v285_v36 }
 0x44e   :  { %360 = vtanh.f32 %v286_v37 }
 0x454   :  { %v361_v38 = vpop.eup %360 }
 0x455   :  { %327 = vmatmul.f32.vlgmr.msrb.gmra.mxu2 %v361_v38 }
 0x4d8   :  { %v328_v39 = vpop.f32.mrf.mxu2 }
 0x4d9   :  { %v329_v40 = vadd.f32 %v353_v28, %v328_v39 }
 0x4db   :  { %v331_v41 = vadd.f32 %v361_v38, %v329_v40 }
 0x4dd   :  { %332 = vst [vmem:[%s457_s4] sm:$0xff] %v331_v41 }
 0x4de   :  { %337 = vsyncpa [#allocation3], 1 }

</bundles_post_ra>
